<compile_context>
chip_gen: v5e
topology: v5e:2x2
jax: 0.10.0
libtpu: 0.0.40
codegen_flags: <defaults>
</compile_context>

<pallas_src>
import functools

import jax
import jax.numpy as jnp
from jax.experimental import pallas as pl
from jax.experimental.pallas import tpu as pltpu


def _round_up(x, m):
    return (x + m - 1) // m * m


def _adapter_kernel(pair_ref, scale_ref, x_ref, w1_ref, w2_ref, o_ref, *,
                    apply_y_scale):
    # pair_ref : SMEM int32[n_tiles]   tile index -> weight-pair index
    # scale_ref: SMEM f32[2 * P]       per pair: [1 - ratio, y_scale]
    # x_ref    : (1, C, T)             channel-major feature tile (T packed lanes)
    # w1_ref   : (1, C_r_max, C)       torch fc[0].weight (out, in), zero-padded
    # w2_ref   : (1, C, C_r_max)       torch fc[2].weight (out, in), maybe *ratio
    # o_ref    : (1, C, T)
    j = pl.program_id(1)
    p = pair_ref[j]

    x = x_ref[0]                                       # (C, T)
    w1 = w1_ref[0]                                     # (C_r_max, C)
    w2 = w2_ref[0]                                     # (C, C_r_max)

    h = jnp.maximum(jnp.dot(w1, x, preferred_element_type=jnp.float32), 0.0)
    y = jnp.maximum(jnp.dot(w2, h, preferred_element_type=jnp.float32), 0.0)
    if apply_y_scale:                  # only when some ratio < 0 (fold invalid)
        y = y * scale_ref[2 * p + 1]

    res_scale = scale_ref[2 * p]       # 1 - ratio
    out = y + res_scale * x.astype(jnp.float32)
    o_ref[0] = out.astype(o_ref.dtype)


def _pick_tile(c, itemsize, n_pairs, c_r_max, *, tile=512, vmem_limit_bytes=None):
    """Largest lane tile (multiple of 128, capped at `tile`) fitting VMEM budget."""
    if vmem_limit_bytes is None:
        # Fits v7x's 32 MiB scoped default with headroom; trivially fits
        # v5e/v6e's 128 MiB.
        vmem_limit_bytes = 24 * 1024 * 1024
    w_bytes = 2 * 2 * n_pairs * c_r_max * c * 4           # both stacks, dbuf'd
    per_lane = 2 * 2 * c * itemsize + (2 * c + c_r_max) * 4  # dbuf in/out + f32 temps
    t = (vmem_limit_bytes - w_bytes - (1 << 20)) // per_lane
    t = min(int(tile), int(t))
    t = max(128, (t // 128) * 128)
    return int(t), int(vmem_limit_bytes)


def _fused_adapter_apply(feats, w1s, w2s, ratios, *, tile=512,
                         vmem_limit_bytes=None):
    """Run every adapter in ONE pallas_call.

    feats : list of (BS, C, H, W) arrays (common BS, C, dtype).
    w1s   : list of (C_r_i, C)  torch fc[0].weight (out, in) — used as-is.
    w2s   : list of (C, C_r_i)  torch fc[2].weight (out, in) — used as-is.
    ratios: list of python floats.
    Returns the adapted features, same shapes/order as `feats`.
    """
    n = len(feats)
    bs, c, _, _ = feats[0].shape
    dtype = feats[0].dtype
    itemsize = jnp.dtype(dtype).itemsize
    for f in feats:
        # TODO(synk): group features by channel count / dtype and emit one
        # fused call per group if levels ever have different widths.
        assert f.shape[0] == bs and f.shape[1] == c and f.dtype == dtype, (
            "fused path requires a common (BS, C, dtype) across adapted features")

    c_r_max = max(int(w.shape[0]) for w in w1s)
    t, vmem_limit_bytes = _pick_tile(c, itemsize, n, c_r_max, tile=tile,
                                     vmem_limit_bytes=vmem_limit_bytes)

    needs_y_scale = any(float(r) < 0.0 for r in ratios)

    # Stack weights, zero-padding the hidden dim; fold ratio into W2 when all
    # ratios are >= 0 (relu(a z) = a relu(z) requires a >= 0).
    w1_stack = jnp.zeros((n, c_r_max, c), jnp.float32)
    w2_stack = jnp.zeros((n, c, c_r_max), jnp.float32)
    scales = []
    for i, (w1, w2, r) in enumerate(zip(w1s, w2s, ratios)):
        r = float(r)
        c_r = int(w1.shape[0])
        w1_stack = w1_stack.at[i, :c_r, :].set(w1.astype(jnp.float32))
        w2f = w2.astype(jnp.float32)
        if needs_y_scale:
            y_scale = r
        else:
            w2f = w2f * jnp.float32(r)
            y_scale = 1.0
        w2_stack = w2_stack.at[i, :, :c_r].set(w2f)
        scales.extend([1.0 - r, y_scale])
    scales = jnp.asarray(scales, jnp.float32)

    # Pack every feature's HW onto the lane axis (one fused pad+concat).
    # Padded lanes are zeros, stay zero through the column-local MLP, and are
    # dropped again when unpacking.
    # TODO(synk): in a real pipeline, have the feature producer write directly
    # into this packed slab so the pack/unpack passes disappear entirely.
    pieces, pair_idx, offsets, segs = [], [], [], []
    off = 0
    for i, f in enumerate(feats):
        _, _, h, w = f.shape
        hw = h * w
        seg = _round_up(hw, t)
        x = f.reshape(bs, c, hw)
        if seg != hw:
            x = jnp.pad(x, ((0, 0), (0, 0), (0, seg - hw)))
        pieces.append(x)
        pair_idx.extend([i] * (seg // t))
        offsets.append(off)
        segs.append(seg)
        off += seg
    slab = jnp.concatenate(pieces, axis=-1) if len(pieces) > 1 else pieces[0]
    l_total = off
    n_tiles = l_total // t
    pair_idx = jnp.asarray(pair_idx, jnp.int32)

    kernel = functools.partial(_adapter_kernel, apply_y_scale=needs_y_scale)

    out_slab = pl.pallas_call(
        kernel,
        out_shape=jax.ShapeDtypeStruct((bs, c, l_total), dtype),
        grid_spec=pltpu.PrefetchScalarGridSpec(
            num_scalar_prefetch=2,          # (pair_idx, scales) -> SMEM
            grid=(bs, n_tiles),
            in_specs=[
                pl.BlockSpec((1, c, t), lambda b, j, pair, sc: (b, 0, j)),
                pl.BlockSpec((1, c_r_max, c),
                             lambda b, j, pair, sc: (pair[j], 0, 0)),
                pl.BlockSpec((1, c, c_r_max),
                             lambda b, j, pair, sc: (pair[j], 0, 0)),
            ],
            out_specs=pl.BlockSpec((1, c, t), lambda b, j, pair, sc: (b, 0, j)),
        ),
        compiler_params=pltpu.CompilerParams(
            dimension_semantics=("parallel", "parallel"),
            vmem_limit_bytes=vmem_limit_bytes,
        ),
    )(pair_idx, scales, slab, w1_stack, w2_stack)

    outs = []
    for f, o in zip(feats, offsets):
        _, _, h, w = f.shape
        hw = h * w
        outs.append(out_slab[:, :, o:o + hw].reshape(bs, c, h, w))
    return outs


def mlp_adapter_forward(src, params, levels, ratios, *, tile=512,
                        vmem_limit_bytes=None):
    """src: {level: {modality: (BS, C, H, W)}} — mirrors the PyTorch module.

    params: {level: {modality: (w1, w2)}} with w1: (C_r, C), w2: (C, C_r)
            in torch nn.Linear (out, in) layout, used as-is (no transpose).
    """
    entries = []
    for level, features in src.items():
        if level in levels:
            for modality, feature in features.items():
                w1, w2 = params[level][modality]
                entries.append((level, modality, feature, w1, w2,
                                float(ratios[modality])))

    out = {level: (dict(features) if level in levels else features)
           for level, features in src.items()}
    if not entries:
        return out

    adapted = _fused_adapter_apply(
        [e[2] for e in entries],
        [e[3] for e in entries],
        [e[4] for e in entries],
        [e[5] for e in entries],
        tile=tile, vmem_limit_bytes=vmem_limit_bytes)
    for (level, modality, *_), y in zip(entries, adapted):
        out[level][modality] = y
    return out


def _ref_forward(src, params, levels, ratios):
    """Pure-JAX reference mirroring the torch module (token-major)."""
    out = {}
    for level, features in src.items():
        if level not in levels:
            out[level] = features
            continue
        new_feats = {}
        for modality, feature in features.items():
            bs, c, h, w = feature.shape
            x = jnp.transpose(feature.reshape(bs, c, h * w), (0, 2, 1))
            w1, w2 = params[level][modality]          # (C_r, C), (C, C_r)
            hid = jnp.maximum(x @ w1.T, 0.0)
            y = jnp.maximum(hid @ w2.T, 0.0)
            r = ratios[modality]
            x = r * y + (1.0 - r) * x
            new_feats[modality] = jnp.transpose(x, (0, 2, 1)).reshape(bs, c, h, w)
        out[level] = new_feats
    return out


if __name__ == "__main__":
    key = jax.random.PRNGKey(0)

    BS, C = 2, 128
    spatial = {"p3": (16, 16), "p4": (10, 10), "p5": (8, 8)}   # p5 not adapted
    levels = ("p3", "p4")
    modalities = ("camera", "lidar")
    reduction = {"camera": 4, "lidar": 8}
    ratios = {"camera": 0.2, "lidar": 0.6}

    # Weights in torch nn.Linear (out, in) layout: w1 (C_r, C), w2 (C, C_r).
    params = {}
    for level in levels:
        params[level] = {}
        for modality in modalities:
            c_r = C // reduction[modality]
            key, k1, k2 = jax.random.split(key, 3)
            w1 = jax.random.normal(k1, (c_r, C), jnp.float32) * 0.05
            w2 = jax.random.normal(k2, (C, c_r), jnp.float32) * 0.05
            params[level][modality] = (w1, w2)

    # Synthetic NCHW features (including one pass-through level).
    src = {}
    for level, (H, W) in spatial.items():
        src[level] = {}
        for modality in modalities:
            key, kf = jax.random.split(key)
            src[level][modality] = jax.random.normal(
                kf, (BS, C, H, W), jnp.float32)

    # Main path: all ratios >= 0 (ratio folded into W2, single fused call).
    ref = _ref_forward(src, params, levels, ratios)
    out = mlp_adapter_forward(src, params, levels, ratios)
    out = jax.tree_util.tree_map(jax.block_until_ready, out)
    for level in spatial:
        for modality in modalities:
            a, b = out[level][modality], ref[level][modality]
            assert a.shape == src[level][modality].shape
            assert jnp.allclose(a, b, atol=1e-3, rtol=1e-3), (level, modality)

    # Negative-ratio path: y_scale applied after the relu, no fold into W2.
    neg_ratios = {"camera": 0.2, "lidar": -0.3}
    ref_neg = _ref_forward(src, params, levels, neg_ratios)
    out_neg = mlp_adapter_forward(src, params, levels, neg_ratios)
    out_neg = jax.tree_util.tree_map(jax.block_until_ready, out_neg)
    for level in levels:
        for modality in modalities:
            a, b = out_neg[level][modality], ref_neg[level][modality]
            assert jnp.allclose(a, b, atol=1e-3, rtol=1e-3), (level, modality)

    print("KERNEL_OK")
</pallas_src>

<mosaic_0001>
module attributes {stable_mosaic.version = 11 : i64} {
  func.func @_adapter_kernel(%arg0: i32, %arg1: i32, %arg2: memref<4xi32, #tpu.memory_space<smem>>, %arg3: memref<8xf32, #tpu.memory_space<smem>>, %arg4: memref<1x128x512xf32, #tpu.memory_space<vmem>>, %arg5: memref<1x32x128xf32, #tpu.memory_space<vmem>>, %arg6: memref<1x128x32xf32, #tpu.memory_space<vmem>>, %arg7: memref<1x128x512xf32, #tpu.memory_space<vmem>>) attributes {dimension_semantics = [#tpu.dimension_semantics<parallel>, #tpu.dimension_semantics<parallel>], iteration_bounds = array<i64: 2, 4>, scalar_prefetch = 2 : i64, scratch_operands = 0 : i64, tpu.core_type = #tpu.core_type<tc>, window_params = [{transform_indices = @transform_0, window_bounds = array<i64: 1, 128, 512>}, {transform_indices = @transform_1, window_bounds = array<i64: 1, 32, 128>}, {transform_indices = @transform_2, window_bounds = array<i64: 1, 128, 32>}, {transform_indices = @transform_3, window_bounds = array<i64: 1, 128, 512>}]} {
    %0 = arith.index_cast %arg1 : i32 to index
    %1 = memref.load %arg2[%0] : memref<4xi32, #tpu.memory_space<smem>>
    %c0 = arith.constant 0 : index
    %c0_0 = arith.constant 0 : index
    %c0_1 = arith.constant 0 : index
    %2 = vector.load %arg4[%c0, %c0_0, %c0_1] : memref<1x128x512xf32, #tpu.memory_space<vmem>>, vector<1x128x512xf32>
    %3 = vector.shape_cast %2 : vector<1x128x512xf32> to vector<128x512xf32>
    %c0_2 = arith.constant 0 : index
    %c0_3 = arith.constant 0 : index
    %c0_4 = arith.constant 0 : index
    %4 = vector.load %arg5[%c0_2, %c0_3, %c0_4] : memref<1x32x128xf32, #tpu.memory_space<vmem>>, vector<1x32x128xf32>
    %5 = vector.shape_cast %4 : vector<1x32x128xf32> to vector<32x128xf32>
    %c0_5 = arith.constant 0 : index
    %c0_6 = arith.constant 0 : index
    %c0_7 = arith.constant 0 : index
    %6 = vector.load %arg6[%c0_5, %c0_6, %c0_7] : memref<1x128x32xf32, #tpu.memory_space<vmem>>, vector<1x128x32xf32>
    %7 = vector.shape_cast %6 : vector<1x128x32xf32> to vector<128x32xf32>
    %cst = arith.constant dense<0.000000e+00> : vector<32x512xf32>
    %8 = tpu.matmul %5, %3, %cst {dimension_numbers = #tpu.dot_dimension_numbers<[1], [0], [0], [1], [0, 0, 1, 1], [], []>} : vector<32x128xf32>, vector<128x512xf32>, vector<32x512xf32> -> vector<32x512xf32>
    %cst_8 = arith.constant 0.000000e+00 : f32
    %9 = vector.broadcast %cst_8 : f32 to vector<32x512xf32>
    %10 = arith.maximumf %8, %9 : vector<32x512xf32>
    %cst_9 = arith.constant dense<0.000000e+00> : vector<128x512xf32>
    %11 = tpu.matmul %7, %10, %cst_9 {dimension_numbers = #tpu.dot_dimension_numbers<[1], [0], [0], [1], [0, 0, 1, 1], [], []>} : vector<128x32xf32>, vector<32x512xf32>, vector<128x512xf32> -> vector<128x512xf32>
    %cst_10 = arith.constant 0.000000e+00 : f32
    %12 = vector.broadcast %cst_10 : f32 to vector<128x512xf32>
    %13 = arith.maximumf %11, %12 : vector<128x512xf32>
    %c2_i32 = arith.constant 2 : i32
    %14 = arith.muli %c2_i32, %1 : i32
    %15 = arith.index_cast %14 : i32 to index
    %16 = memref.load %arg3[%15] : memref<8xf32, #tpu.memory_space<smem>>
    %17 = vector.broadcast %16 : f32 to vector<128x512xf32>
    %18 = arith.mulf %17, %3 : vector<128x512xf32>
    %19 = arith.addf %13, %18 : vector<128x512xf32>
    %c0_11 = arith.constant 0 : index
    %c0_12 = arith.constant 0 : index
    %c0_13 = arith.constant 0 : index
    %20 = vector.load %arg7[%c0_11, %c0_12, %c0_13] : memref<1x128x512xf32, #tpu.memory_space<vmem>>, vector<1x128x512xf32>
    %21 = vector.shape_cast %20 : vector<1x128x512xf32> to vector<128x512xf32>
    %22 = vector.shape_cast %19 : vector<128x512xf32> to vector<1x128x512xf32>
    tpu.vector_store %arg7[%c0_11, %c0_12, %c0_13], %22 {strides = array<i32>} : memref<1x128x512xf32, #tpu.memory_space<vmem>>, vector<1x128x512xf32>,
    return
  }
  func.func @transform_0(%arg0: i32, %arg1: i32, %arg2: memref<4xi32, #tpu.memory_space<smem>>, %arg3: memref<8xf32, #tpu.memory_space<smem>>) -> (i32, i32, i32) {
    %c0_i32 = arith.constant 0 : i32
    %c0_i32_0 = arith.constant 0 : i32
    return %arg0, %c0_i32, %arg1 : i32, i32, i32
  }
  func.func @transform_1(%arg0: i32, %arg1: i32, %arg2: memref<4xi32, #tpu.memory_space<smem>>, %arg3: memref<8xf32, #tpu.memory_space<smem>>) -> (i32, i32, i32) {
    %0 = arith.index_cast %arg1 : i32 to index
    %1 = memref.load %arg2[%0] : memref<4xi32, #tpu.memory_space<smem>>
    %c0_i32 = arith.constant 0 : i32
    %c0_i32_0 = arith.constant 0 : i32
    %c0_i32_1 = arith.constant 0 : i32
    return %1, %c0_i32, %c0_i32_0 : i32, i32, i32
  }
  func.func @transform_2(%arg0: i32, %arg1: i32, %arg2: memref<4xi32, #tpu.memory_space<smem>>, %arg3: memref<8xf32, #tpu.memory_space<smem>>) -> (i32, i32, i32) {
    %0 = arith.index_cast %arg1 : i32 to index
    %1 = memref.load %arg2[%0] : memref<4xi32, #tpu.memory_space<smem>>
    %c0_i32 = arith.constant 0 : i32
    %c0_i32_0 = arith.constant 0 : i32
    %c0_i32_1 = arith.constant 0 : i32
    return %1, %c0_i32, %c0_i32_0 : i32, i32, i32
  }
  func.func @transform_3(%arg0: i32, %arg1: i32, %arg2: memref<4xi32, #tpu.memory_space<smem>>, %arg3: memref<8xf32, #tpu.memory_space<smem>>) -> (i32, i32, i32) {
    %c0_i32 = arith.constant 0 : i32
    %c0_i32_0 = arith.constant 0 : i32
    return %arg0, %c0_i32, %arg1 : i32, i32, i32
  }
}

</mosaic_0001>

<bundles_post_ra>
// kernel: tpu_custom_call.1
= control target key start
LH: loop header
LB: loop body
LE: loop exit
PB: predicated region body
PF: predicated region fallthrough
CT: control target
= control target key end

     0   :  { %s1652_s24 = smov [#allocation3]   ;;  %s1653_s25 = smov [#allocation4]   ;;  %s2454_s0 = inlined_call_operand.hbm [shape: s32[4], index: 0, kind: input, shape index: {}]   ;;  %s2455_s2 = inlined_call_operand.hbm [shape: f32[2,128,2048], index: 2, kind: input, shape index: {}]   ;;  %s2456_s3 = inlined_call_operand.hbm [shape: f32[4,32,128], index: 3, kind: input, shape index: {}]   ;;  %s2457_s4 = inlined_call_operand.vmem [shape: f32[4,128,32], index: 4, kind: input, shape index: {}]   ;;  %s2458_s5 = inlined_call_operand.hbm [shape: f32[2,128,2048], index: 5, kind: output, shape index: {}]   ;;  %s2459_s1 = inlined_call_operand.hbm [shape: f32[8], index: 1, kind: input, shape index: {}]  }
   0x1   :  { %2468 = sst [smem:[#allocation49_spill]] %s2455_s2  ;;  %s11_s20 = sshll.u32 %s2454_s0, 4  ;;  %s12_s20 = int_to_ptr.hbm [resolvable:$true] %s11_s20 }
   0x2   :  { %s16_s23 = sshll.u32 %s2459_s1, 4  ;;  %s17_s23 = int_to_ptr.hbm [resolvable:$true] %s16_s23 }
   0x3   :  { %14 = dma.hbm_to_smem %s12_s20, 16, %s1652_s24, [#allocation2] }
   0x4   :  { %19 = dma.hbm_to_smem %s17_s23, 16, %s1653_s25, [#allocation2] }
   0x5   :  { %1594 = dma.done.wait [#allocation2], 32 }
   0x6   :  { %1595 = vsyncadd [#allocation2], 4294967264 }
   0x7   :  { %22 = sfence }
   0x8   :  { %23 = vsyncpa [#allocation6], 0 }
   0x9   :  { %25 = vsyncpa [#allocation6 + $0x1], 0 }
   0xa   :  { %26 = vsyncpa [#allocation9], 0 }
   0xb   :  { %28 = vsyncpa [#allocation9 + $0x1], 0 }
   0xc   :  { %29 = vsyncpa [#allocation7], 0 }
   0xd   :  { %31 = vsyncpa [#allocation7 + $0x1], 0  ;;  %s1698_s0 = smov 0   ;;  %s1700_s26 = smov 0  }
   0xe   :  { %s1702_s1 = smov 0   ;;  %s1704_s27 = smov 0  }
   0xf   :  { %s1706_s28 = smov 0   ;;  %s1708_s29 = smov 0  }
  0x10   :  { %s1710_s30 = smov 0   ;;  %s1712_s6 = smov 0  }
  0x11   :  { %s1714_s7 = smov 0   ;;  %s1716_s8 = smov 0  }
  0x12   :  { %s1718_s9 = smov 0  }
  0x13 LB: > { %2469 = sst [smem:[#allocation17_spill]] %s1630_s29  ;;  %s2460_s10 = sadd.s32 4294967295, %s1650_s9   ;;  %s1650_s9 = sphi %s1718_s9, %s37_s9   ;;  %s1646_s8 = sphi %s1716_s8, %s2541_s8   ;;  %s1642_s7 = sphi %s1714_s7, %s2550_s7   ;;  %s1638_s6 = sphi %s1712_s6, %s2549_s6   ;;  %s1634_s30 = sphi %s1710_s30, %s2548_s30   ;;  %s1630_s29 = sphi %s1708_s29, %s2547_s29   ;;  %s1626_s28 = sphi %s1706_s28, %s2546_s28   ;;  %s1622_s27 = sphi %s1704_s27, %s2545_s27   ;;  %s1618_s1 = sphi %s1702_s1, %s2544_s1   ;;  %s1614_s26 = sphi %s1700_s26, %s2543_s26   ;;  %s1610_s0 = sphi %s1698_s0, %s2542_s0  }
  0x14   : > { %2470 = sst [smem:[#allocation18_spill]] %s1642_s7  ;;  %s1228_s11 = sadd.s32 4294967294, %s1650_s9  }
  0x15   : > { %2471 = sst [smem:[#allocation19_spill]] %s1646_s8  ;;  %s46_s12 = sadd.s32 1, %s1642_s7 }
  0x16   : > { %s49_s13 = sadd.s32 1, %s1646_s8  ;;  %p47_p0 = scmp.ge.s32.totalorder %s46_s12, 4 }
  0x17   : > { %s58_s14 = sadd.s32 1, %s1630_s29  ;;  %p65_p1 = scmp.ne.s32.totalorder %s1630_s29, %s1626_s28 }
  0x18   : > { %p66_p2 = scmp.eq.s32.totalorder %s1650_s9, 0  ;;  %s2552_s12 = smov (%p47_p0, %s46_s12), 0 }
  0x19   : > { %2472 = sst [smem:[#allocation20_spill]] %s2552_s12  ;;  %s2554_s13 = smov (!%p47_p0, %s49_s13), %s1646_s8 }
  0x1a   : > { %s54_s15 = ssub.s32 %s1642_s7, %s2552_s12  ;;  %p1768_p3 = por %p66_p2, %p65_p1 }
  0x1b   : > { %p51_p4 = scmp.ge.s32.totalorder %s2554_s13, 2  ;;  %p71_p5 = scmp.ne.s32.totalorder %s1626_s28, %s1622_s27 }
  0x1c   : > { %s1775_s17 = sld [smem:[#allocation3 + %s1642_s7]]  ;;  %p153_p6 = scmp.eq.s32.totalorder %s2460_s10, 7 }
  0x1d   : > { %s2556_s13 = smov (%p51_p4, %s2554_s13), 0  ;;  %s1782_s18 = sld [smem:[#allocation3 + %s2552_s12]] }
  0x1e   : > { %2474 = sst [smem:[#allocation21_spill]] %s2556_s13  ;;  %p1784_p7 = por %p153_p6, %p65_p1 }
  0x1f   : > { %s53_s20 = ssub.s32 %s1646_s8, %s2556_s13  ;;  %p159_p8 = scmp.eq.s32.totalorder %s1228_s11, 7 }
  0x20   : > { %s2475_s19 = scalar_select %p1784_p7, 1, 0 }
  0x21   : > { %s55_s21 = sor.u32 %s54_s15, %s53_s20  ;;  %p1793_p10 = por %p159_p8, %p71_p5 }
  0x22   : > { %2476 = sst [smem:[#allocation22_spill]] %s2475_s19  ;;  %p56_p9 = scmp.eq.s32.totalorder %s55_s21, 0 }
  0x23   : > { %p1338_p11 = scmp.lt.s32.totalorder %s1650_s9, 8  ;;  %s179_s23 = sand.u32 1, %s1630_s29  }
  0x24   : > { %s1800_s24 = scalar_select %p56_p9, %s1630_s29, %s58_s14  }
  0x25   : > { %s1231_s25 = sshll.u32 %s179_s23, 9  ;;  %s1232_s10 = sshll.u32 %s1642_s7, 2 }
  0x26   : > { %2478 = sst [smem:[#allocation23_spill]] %s1800_s24  ;;  %s1233_s12 = sshll.u32 %s1646_s8, 8 }
  0x27   : > { %s183_s13 = scalar_lea.vmem [#allocation5], %s1231_s25  ;;  %s188_s11 = sadd.s32 %s1233_s12, %s1232_s10 }
  0x28   : > { %s193_s19 = sshll.u32 %s183_s13, 4  ;;  %s1234_s15 = sshll.u32 %s188_s11, 3  ;;  %s194_s19 = int_to_ptr.vmem [resolvable:$true] %s193_s19 }
  0x29   : > { %p1326_p12 = pnand %p1338_p11, %p1768_p3  ;;  %s2479_s2 = sld [smem:[#allocation49_spill]] }
  0x2a   : > { %p1238_p13 = scmp.ge.s32.totalorder %s1650_s9, 1  ;;  %s180_s10 = scalar_lea.sflag [#allocation6], %s179_s23 }
  0x2b   : > { %s1654_s12 = smov 2048   ;;  %s1655_s13 = smov 512  }
  0x2c   : > { %s1656_s16 = smov 32   ;;  %p234_p0 = scmp.lt.s32.totalorder %s1650_s9, 9 }
  0x2d   : > { %s83_s20 = ssub.s32 %s1775_s17, %s1782_s18  ;;  %s86_s21 = sadd.s32 1, %s1618_s1 }
  0x2e   : > { %p1813_p1 = pnand %p1238_p13, %p234_p0  ;;  %p84_p4 = scmp.eq.s32.totalorder %s83_s20, 0 }
  0x2f   : > { %s190_s14 = scalar_lea.hbm %s2479_s2, %s1234_s15  ;;  %s2481_s15 = sadd.s32 4294967295, %s1650_s9  }
  0x30   : > { %s191_s25 = sshll.u32 %s190_s14, 4  ;;  %p72_p3 = scmp.eq.s32.totalorder %s2481_s15, 0  ;;  %s192_s25 = int_to_ptr.hbm [resolvable:$true] %s191_s25 }
  0x31   : > { %1328 = dma.hbm_to_vmem [thread:$0]  (!%p1326_p12), %s192_s25, 8192, %s194_s19, %s180_s10, %s1654_s12, %s1655_s13, %s1656_s16  }
  0x32   : > { %p1825_p6 = por %p72_p3, %p71_p5  ;;  %p93_p8 = scmp.ne.s32.totalorder %s1618_s1, %s1614_s26 }
  0x33   : > { %s1832_s19 = scalar_select %p84_p4, %s1618_s1, %s86_s21  }
  0x34   : > { %p99_p9 = scmp.ne.s32.totalorder %s1614_s26, %s1610_s0  ;;  %p95_p12 = por %p93_p8, %p66_p2 }
  0x35   : > { %s203_s14 = sand.u32 1, %s1618_s1  }
  0x36   : > { %p1839_p13 = por %p99_p9, %p72_p3  ;;  %s1235_s10 = sshll.u32 %s203_s14, 5 }
  0x37   : > { %p1845_p0 = pnand %p1338_p11, %p95_p12  ;;  %s207_s13 = scalar_lea.vmem [#allocation8], %s1235_s10 }
  0x38   : > { %s1318_s18 = scalar_select %p95_p12, [#allocation3], [#allocation11] }
  0x39   : > { %s1319_s12 = scalar_select %p95_p12, %s1642_s7, 0 }
  0x3a   : > { %s2558_s18 = smov (!%p1338_p11, %s1318_s18), [#allocation12]  ;;  %s216_s16 = sshll.u32 %s207_s13, 4  ;;  %s217_s16 = int_to_ptr.vmem [resolvable:$true] %s216_s16 }
  0x3b   : > { %s2560_s12 = smov (!%p1338_p11, %s1319_s12), 0  ;;  %s204_s24 = scalar_lea.sflag [#allocation9], %s203_s14 }
  0x3c   : > { %s208_s0 = sld [smem:[%s2558_s18 + %s2560_s12]]  ;;  %p1496_p5 = pneg %p1845_p0 }
  0x3d   : > { %s1499_s12 = scalar_lea.hbm %s2456_s3, 128 }
  0x42   : > { %s1315_s15 = sshll.u32 %s208_s0, 5 }
  0x43   : > { %s213_s2 = scalar_lea.hbm %s2456_s3, %s1315_s15 }
  0x44   : > { %s214_s8 = sshll.u32 %s213_s2, 4  ;;  %s215_s8 = int_to_ptr.hbm [resolvable:$true] %s214_s8 }
  0x45   : > { %s1492_s29 = sshra.s32 %s215_s8, 4  ;;  %s1493_s29 = int_to_ptr.hbm [resolvable:$true] %s1492_s29 }
  0x46   : > { %s1494_s7 = scalar_lea.hbm %s1493_s29, 32  ;;  %p1500_p4 = scmp.lt.s32.totalorder %s1493_s29, %s2456_s3 }
  0x47   : > { %p1495_p2 = scmp.ne.s32.totalorder %s1493_s29, %s1494_s7  ;;  %p1501_p8 = scmp.lt.s32.totalorder %s1499_s12, %s1494_s7 }
  0x49   : > { %p1497_p3 = pnand %p1496_p5, %p1495_p2  ;;  %p1502_p9 = por %p1501_p8, %p1500_p4 }
  0x4b   : > { %p1498_p11 = pneg %p1497_p3 }
  0x4d   : > { %p1503_p12 = pnand %p1502_p9, %p1498_p11 }
  0x4f   : > { %1506 = shalt.err (!%p1503_p12)
}
  0x50   : > { %s1657_s2 = smov 128   ;;  %s1658_s14 = smov 8  }
  0x51   : > { %1333 = dma.hbm_to_vmem [thread:$0]  (!%p1845_p0), %s215_s8, 512, %s217_s16, %s204_s24, %s1657_s2, %s1657_s2, %s1658_s14  }
  0x52   : > { %238 = sbr.rel (%p1813_p1) target bundleno = 562 (0x232), region = 32 }
  0x57   : > { %s1870_s15 = sand.u32 1, %s1626_s28  }
  0x58   : > { %s1239_s29 = sshll.u32 %s1870_s15, 9  ;;  %s241_s7 = scalar_lea.sflag [#allocation6], %s1870_s15 }
  0x59   : > { %s1876_s20 = scalar_lea.vmem [#allocation5], %s1239_s29 }
  0x5a   : > { %1597 = dma.done.wait (%p1825_p6), %s241_s7, 8192  }
  0x5b   : > { %1599 = vsyncadd (%p1825_p6), %s241_s7, 4294959104  ;;  %s250_s8 = sand.u32 1, %s1614_s26  }
  0x5c   : > { %s1240_s24 = sshll.u32 %s250_s8, 5  ;;  %s251_s11 = scalar_lea.sflag [#allocation9], %s250_s8 }
  0x5d   : > { %s1883_s17 = scalar_lea.vmem [#allocation8], %s1240_s24 }
  0x5e   : > { %1601 = dma.done.wait (%p1839_p13), %s251_s11, 512  }
  0x5f   : > { %1603 = vsyncadd (%p1839_p13), %s251_s11, 4294966784  ;;  %s299_s23 = sld [smem:[#allocation3 + %s1634_s30]]  ;;  %v360_v0 = vld [vmem:[%s1876_s20 + $0x1e0] sm:$0xff]  ;;  %v361_v1 = vld [vmem:[%s1876_s20 + $0x1e8] sm:$0xff]  ;;  %vm516_vm0 = vcmask 261120   ;;  %s2244_s13 = scalar_lea.vmem [#allocation10], %s1239_s29 }
  0x60   : > { %v362_v2 = vld [vmem:[%s1876_s20 + $0x1f0] sm:$0xff]  ;;  %384 = vmatpush.msra.mxu0 %v360_v0  ;;  %413 = vmatpush.msra.mxu1 %v361_v1  ;;  %v363_v3 = vld [vmem:[%s1876_s20 + $0x1f8] sm:$0xff]  ;;  %v356_v4 = vld [vmem:[%s1876_s20 + $0x1c0] sm:$0xff]  ;;  %s291_s21 = sld [smem:[#allocation3 + %s1634_s30]]  ;;  %s1310_s2 = sshll.u32 %s1634_s30, 2 }
  0x61   : > { %v357_v5 = vld [vmem:[%s1876_s20 + $0x1c8] sm:$0xff]  ;;  %442 = vmatpush.msra.mxu2 %v362_v2  ;;  %471 = vmatpush.msra.mxu3 %v363_v3  ;;  %v358_v6 = vld [vmem:[%s1876_s20 + $0x1d0] sm:$0xff]  ;;  %v359_v7 = vld [vmem:[%s1876_s20 + $0x1d8] sm:$0xff]  ;;  %s1311_s14 = sshll.u32 %s1638_s6, 8  ;;  %s1099_s8 = sshll.u32 %s2244_s13, 4  ;;  %s1100_s8 = int_to_ptr.vmem [resolvable:$true] %s1099_s8 }
  0x62   : > { %v352_v8 = vld [vmem:[%s1876_s20 + $0x1a0] sm:$0xff]  ;;  %385 = vmatpush.msra.mxu0 %v356_v4  ;;  %414 = vmatpush.msra.mxu1 %v357_v5  ;;  %v353_v9 = vld [vmem:[%s1876_s20 + $0x1a8] sm:$0xff]  ;;  %v354_v10 = vld [vmem:[%s1876_s20 + $0x1b0] sm:$0xff]  ;;  %s1096_s29 = sadd.s32 %s1311_s14, %s1310_s2 }
  0x63   : > { %v355_v11 = vld [vmem:[%s1876_s20 + $0x1b8] sm:$0xff]  ;;  %443 = vmatpush.msra.mxu2 %v358_v6  ;;  %472 = vmatpush.msra.mxu3 %v359_v7  ;;  %v348_v12 = vld [vmem:[%s1876_s20 + $0x180] sm:$0xff]  ;;  %v349_v13 = vld [vmem:[%s1876_s20 + $0x188] sm:$0xff]  ;;  %s1312_s30 = sshll.u32 %s1096_s29, 3 }
  0x64   : > { %386 = vmatpush.msra.mxu0 %v352_v8  ;;  %415 = vmatpush.msra.mxu1 %v353_v9  ;;  %v350_v14 = vld [vmem:[%s1876_s20 + $0x190] sm:$0xff]  ;;  %v351_v15 = vld [vmem:[%s1876_s20 + $0x198] sm:$0xff]  ;;  %v344_v17 = vld [vmem:[%s1876_s20 + $0x160] sm:$0xff] }
  0x65   : > { %s1308_s16 = sshll.u32 %s299_s23, 1  ;;  %444 = vmatpush.msra.mxu2 %v354_v10  ;;  %473 = vmatpush.msra.mxu3 %v355_v11  ;;  %v345_v22 = vld [vmem:[%s1876_s20 + $0x168] sm:$0xff]  ;;  %v346_v27 = vld [vmem:[%s1876_s20 + $0x170] sm:$0xff]  ;;  %v347_v28 = vld [vmem:[%s1876_s20 + $0x178] sm:$0xff] }
  0x66   : > { %s890_s25 = sld [smem:[#allocation4 + %s1308_s16]]  ;;  %387 = vmatpush.msra.mxu0 %v348_v12  ;;  %416 = vmatpush.msra.mxu1 %v349_v13  ;;  %v340_v33 = vld [vmem:[%s1876_s20 + $0x140] sm:$0xff]  ;;  %v341_v34 = vld [vmem:[%s1876_s20 + $0x148] sm:$0xff]  ;;  %v342_v39 = vld [vmem:[%s1876_s20 + $0x150] sm:$0xff]  ;;  %p292_p1 = scmp.lt.s32.totalorder %s291_s21, 3 }
  0x67   : > { %445 = vmatpush.msra.mxu2 %v350_v14  ;;  %474 = vmatpush.msra.mxu3 %v351_v15  ;;  %v343_v40 = vld [vmem:[%s1876_s20 + $0x158] sm:$0xff]  ;;  %v336_v44 = vld [vmem:[%s1876_s20 + $0x120] sm:$0xff]  ;;  %v337_v45 = vld [vmem:[%s1876_s20 + $0x128] sm:$0xff] }
  0x68   : > { %388 = vmatpush.msra.mxu0 %v344_v17  ;;  %417 = vmatpush.msra.mxu1 %v345_v22  ;;  %v338_v49 = vld [vmem:[%s1876_s20 + $0x130] sm:$0xff]  ;;  %v339_v50 = vld [vmem:[%s1876_s20 + $0x138] sm:$0xff]  ;;  %v332_v54 = vld [vmem:[%s1876_s20 + $0x100] sm:$0xff]  ;;  %s2562_s21 = smov (!%p292_p1, %s291_s21), 3 }
  0x69   : > { %446 = vmatpush.msra.mxu2 %v346_v27  ;;  %475 = vmatpush.msra.mxu3 %v347_v28  ;;  %v333_v55 = vld [vmem:[%s1876_s20 + $0x108] sm:$0xff]  ;;  %v334_v59 = vld [vmem:[%s1876_s20 + $0x110] sm:$0xff]  ;;  %v335_v60 = vld [vmem:[%s1876_s20 + $0x118] sm:$0xff]  ;;  %s1316_s18 = sshll.u32 %s2562_s21, 7 }
  0x6a   : > { %389 = vmatpush.msra.mxu0 %v340_v33  ;;  %418 = vmatpush.msra.mxu1 %v341_v34  ;;  %s2156_s0 = scalar_lea.vmem %s2457_s4, %s1316_s18  ;;  %s1542_s18 = scalar_lea.hbm %s2458_s5, 4096 }
  0x6b   : > { %447 = vmatpush.msra.mxu2 %v342_v39  ;;  %476 = vmatpush.msra.mxu3 %v343_v40 }
  0x6c   : > { %v1906_v16 = vstv %s890_s25  ;;  %390 = vmatpush.msra.mxu0 %v336_v44  ;;  %419 = vmatpush.msra.mxu1 %v337_v45 }
  0x6d   : > { %v1910_v18 = vmul.f32 %v1906_v16, %v360_v0  ;;  %v1913_v19 = vmul.f32 %v1906_v16, %v361_v1  ;;  %v1916_v20 = vmul.f32 %v1906_v16, %v362_v2  ;;  %v1919_v21 = vmul.f32 %v1906_v16, %v363_v3  ;;  %448 = vmatpush.msra.mxu2 %v338_v49  ;;  %v2018_v0 = vld [vmem:[%s1876_s20 + $0xe0] sm:$0xff]  ;;  %v2021_v1 = vld [vmem:[%s1876_s20 + $0xe8] sm:$0xff]  ;;  %v330_v3 = vld [vmem:[%s1876_s20 + $0xf0] sm:$0xff] }
  0x6e   : > { %v1923_v23 = vmul.f32 %v1906_v16, %v356_v4  ;;  %v1926_v24 = vmul.f32 %v1906_v16, %v357_v5  ;;  %v1929_v25 = vmul.f32 %v1906_v16, %v358_v6  ;;  %v1932_v26 = vmul.f32 %v1906_v16, %v359_v7  ;;  %477 = vmatpush.msra.mxu3 %v339_v50  ;;  %v331_v4 = vld [vmem:[%s1876_s20 + $0xf8] sm:$0xff]  ;;  %v2035_v7 = vld [vmem:[%s1876_s20 + $0xc0] sm:$0xff] }
  0x6f   : > { %2485 = vst [vmem:[#allocation24_spill] sm:$0xff] %v1910_v18  ;;  %v1937_v29 = vmul.f32 %v1906_v16, %v352_v8  ;;  %v1940_v30 = vmul.f32 %v1906_v16, %v353_v9  ;;  %v1943_v31 = vmul.f32 %v1906_v16, %v354_v10  ;;  %v1946_v32 = vmul.f32 %v1906_v16, %v355_v11  ;;  %v2038_v8 = vld [vmem:[%s1876_s20 + $0xc8] sm:$0xff]  ;;  %v2043_v9 = vld [vmem:[%s1876_s20 + $0xd0] sm:$0xff]  ;;  %v2046_v10 = vld [vmem:[%s1876_s20 + $0xd8] sm:$0xff] }
  0x70   : > { %2486 = vst [vmem:[#allocation25_spill] sm:$0xff] %v1913_v19  ;;  %v1951_v35 = vmul.f32 %v1906_v16, %v348_v12  ;;  %v1954_v36 = vmul.f32 %v1906_v16, %v349_v13  ;;  %v1957_v37 = vmul.f32 %v1906_v16, %v350_v14  ;;  %v1960_v38 = vmul.f32 %v1906_v16, %v351_v15  ;;  %v2049_v11 = vld [vmem:[%s1876_s20 + $0xa0] sm:$0xff]  ;;  %v2052_v12 = vld [vmem:[%s1876_s20 + $0xa8] sm:$0xff]  ;;  %v2057_v13 = vld [vmem:[%s1876_s20 + $0xb0] sm:$0xff] }
  0x71   : > { %2487 = vst [vmem:[#allocation26_spill] sm:$0xff] %v1916_v20  ;;  %v1965_v41 = vmul.f32 %v1906_v16, %v344_v17  ;;  %v1968_v42 = vmul.f32 %v1906_v16, %v345_v22  ;;  %v1971_v43 = vmul.f32 %v1906_v16, %v346_v27  ;;  %v1976_v46 = vmul.f32 %v1906_v16, %v347_v28  ;;  %v2060_v14 = vld [vmem:[%s1876_s20 + $0xb8] sm:$0xff]  ;;  %v2065_v15 = vld [vmem:[%s1876_s20 + $0x80] sm:$0xff]  ;;  %v2068_v17 = vld [vmem:[%s1876_s20 + $0x88] sm:$0xff] }
  0x72   : > { %2488 = vst [vmem:[#allocation27_spill] sm:$0xff] %v1919_v21  ;;  %v1979_v47 = vmul.f32 %v1906_v16, %v340_v33  ;;  %v1982_v48 = vmul.f32 %v1906_v16, %v341_v34  ;;  %v1987_v51 = vmul.f32 %v1906_v16, %v342_v39  ;;  %v1990_v52 = vmul.f32 %v1906_v16, %v343_v40  ;;  %v2073_v22 = vld [vmem:[%s1876_s20 + $0x90] sm:$0xff]  ;;  %v2076_v27 = vld [vmem:[%s1876_s20 + $0x98] sm:$0xff]  ;;  %v2081_v28 = vld [vmem:[%s1876_s20 + $0x60] sm:$0xff] }
  0x73   : > { %2489 = vst [vmem:[#allocation28_spill] sm:$0xff] %v1923_v23  ;;  %v1993_v53 = vmul.f32 %v1906_v16, %v336_v44  ;;  %v1998_v56 = vmul.f32 %v1906_v16, %v337_v45  ;;  %v2001_v57 = vmul.f32 %v1906_v16, %v338_v49  ;;  %v2004_v58 = vmul.f32 %v1906_v16, %v339_v50  ;;  %v2084_v33 = vld [vmem:[%s1876_s20 + $0x68] sm:$0xff]  ;;  %v2089_v34 = vld [vmem:[%s1876_s20 + $0x70] sm:$0xff]  ;;  %v2092_v39 = vld [vmem:[%s1876_s20 + $0x78] sm:$0xff] }
  0x74   : > { %2490 = vst [vmem:[#allocation29_spill] sm:$0xff] %v1926_v24  ;;  %v2009_v61 = vmul.f32 %v1906_v16, %v332_v54  ;;  %v2012_v62 = vmul.f32 %v1906_v16, %v333_v55  ;;  %v2015_v63 = vmul.f32 %v1906_v16, %v334_v59  ;;  %391 = vmatpush.msra.mxu0 %v332_v54  ;;  %v2097_v40 = vld [vmem:[%s1876_s20 + $0x40] sm:$0xff]  ;;  %v2100_v44 = vld [vmem:[%s1876_s20 + $0x48] sm:$0xff]  ;;  %v2105_v45 = vld [vmem:[%s1876_s20 + $0x50] sm:$0xff] }
  0x75   : > { %2491 = vst [vmem:[#allocation30_spill] sm:$0xff] %v1929_v25  ;;  %420 = vmatpush.msra.mxu1 %v333_v55  ;;  %v2024_v2 = vmul.f32 %v1906_v16, %v335_v60  ;;  %449 = vmatpush.msra.mxu2 %v334_v59  ;;  %v2029_v5 = vmul.f32 %v1906_v16, %v330_v3  ;;  %v2108_v49 = vld [vmem:[%s1876_s20 + $0x58] sm:$0xff]  ;;  %v2113_v50 = vld [vmem:[%s1876_s20 + $0x20] sm:$0xff]  ;;  %v2116_v54 = vld [vmem:[%s1876_s20 + $0x28] sm:$0xff] }
  0x76   : > { %2492 = vst [vmem:[#allocation31_spill] sm:$0xff] %v1932_v26  ;;  %478 = vmatpush.msra.mxu3 %v335_v60  ;;  %v2032_v6 = vmul.f32 %v1906_v16, %v331_v4  ;;  %392 = vmatpush.msra.mxu0 %v2018_v0  ;;  %v2121_v55 = vld [vmem:[%s1876_s20 + $0x30] sm:$0xff]  ;;  %v2124_v59 = vld [vmem:[%s1876_s20 + $0x38] sm:$0xff]  ;;  %v2129_v60 = vld [vmem:[%s1876_s20] sm:$0xff] }
  0x77   : > { %2493 = vst [vmem:[#allocation32_spill] sm:$0xff] %v1937_v29  ;;  %421 = vmatpush.msra.mxu1 %v2021_v1  ;;  %450 = vmatpush.msra.mxu2 %v330_v3  ;;  %v2132_v3 = vld [vmem:[%s1876_s20 + $0x8] sm:$0xff]  ;;  %v2140_v21 = vld [vmem:[%s1876_s20 + $0x18] sm:$0xff]  ;;  %v364_v20 = vld [vmem:[%s1883_s17] sm:$0xff] }
  0x78   : > { %2494 = vst [vmem:[#allocation33_spill] sm:$0xff] %v1940_v30  ;;  %479 = vmatpush.msra.mxu3 %v331_v4  ;;  %393 = vmatpush.msra.mxu0 %v2035_v7  ;;  %v2137_v4 = vld [vmem:[%s1876_s20 + $0x10] sm:$0xff]  ;;  %v365_v26 = vld [vmem:[%s1883_s17 + $0x8] sm:$0xff]  ;;  %v367_v19 = vld [vmem:[%s1883_s17 + $0x18] sm:$0xff]  ;;  %s1098_s20 = scalar_lea.hbm %s2458_s5, %s1312_s30 }
  0x79   : > { %2495 = vst [vmem:[#allocation34_spill] sm:$0xff] %v1943_v31  ;;  %422 = vmatpush.msra.mxu1 %v2038_v8  ;;  %451 = vmatpush.msra.mxu2 %v2043_v9  ;;  %v366_v25 = vld [vmem:[%s1883_s17 + $0x10] sm:$0xff]  ;;  %s1101_s11 = sshll.u32 %s1098_s20, 4  ;;  %s1085_s17 = scalar_lea.sflag [#allocation7], %s1870_s15  ;;  %s1102_s11 = int_to_ptr.hbm [resolvable:$true] %s1101_s11 }
  0x7a   : > { %2496 = vst [vmem:[#allocation35_spill] sm:$0xff] %v1946_v32  ;;  %480 = vmatpush.msra.mxu3 %v2046_v10  ;;  %394 = vmatpush.msra.mxu0 %v2049_v11  ;;  %s1536_s23 = sshra.s32 %s1102_s11, 4  ;;  %s1537_s23 = int_to_ptr.hbm [resolvable:$true] %s1536_s23 }
  0x7b   : > { %2497 = vst [vmem:[#allocation36_spill] sm:$0xff] %v1951_v35  ;;  %423 = vmatpush.msra.mxu1 %v2052_v12  ;;  %452 = vmatpush.msra.mxu2 %v2057_v13  ;;  %s1538_s16 = scalar_lea.hbm %s1537_s23, 512  ;;  %p1543_p2 = scmp.lt.s32.totalorder %s1537_s23, %s2458_s5 }
  0x7c   : > { %2498 = vst [vmem:[#allocation37_spill] sm:$0xff] %v1954_v36  ;;  %481 = vmatpush.msra.mxu3 %v2060_v14  ;;  %395 = vmatpush.msra.mxu0 %v2065_v15  ;;  %p1539_p6 = scmp.ne.s32.totalorder %s1537_s23, %s1538_s16  ;;  %p1544_p5 = scmp.lt.s32.totalorder %s1542_s18, %s1538_s16 }
  0x7d   : > { %2499 = vst [vmem:[#allocation38_spill] sm:$0xff] %v1957_v37  ;;  %424 = vmatpush.msra.mxu1 %v2068_v17  ;;  %453 = vmatpush.msra.mxu2 %v2073_v22 }
  0x7e   : > { %2500 = vst [vmem:[#allocation39_spill] sm:$0xff] %v1960_v38  ;;  %482 = vmatpush.msra.mxu3 %v2076_v27  ;;  %396 = vmatpush.msra.mxu0 %v2081_v28  ;;  %p1540_p13 = pnand %p1539_p6, %p1784_p7  ;;  %p1545_p3 = por %p1544_p5, %p1543_p2 }
  0x7f   : > { %2501 = vst [vmem:[#allocation40_spill] sm:$0xff] %v1965_v41  ;;  %425 = vmatpush.msra.mxu1 %v2084_v33  ;;  %454 = vmatpush.msra.mxu2 %v2089_v34 }
  0x80   : > { %2502 = vst [vmem:[#allocation41_spill] sm:$0xff] %v1968_v42  ;;  %483 = vmatpush.msra.mxu3 %v2092_v39  ;;  %397 = vmatpush.msra.mxu0 %v2097_v40  ;;  %p1541_p0 = pneg %p1540_p13 }
  0x81   : > { %2503 = vst [vmem:[#allocation42_spill] sm:$0xff] %v1971_v43  ;;  %426 = vmatpush.msra.mxu1 %v2100_v44  ;;  %455 = vmatpush.msra.mxu2 %v2105_v45 }
  0x82   : > { %2504 = vst [vmem:[#allocation43_spill] sm:$0xff] %v1976_v46  ;;  %484 = vmatpush.msra.mxu3 %v2108_v49  ;;  %398 = vmatpush.msra.mxu0 %v2113_v50  ;;  %p1546_p11 = pnand %p1545_p3, %p1541_p0 }
  0x83   : > { %2505 = vst [vmem:[#allocation44_spill] sm:$0xff] %v1982_v48  ;;  %427 = vmatpush.msra.mxu1 %v2116_v54  ;;  %456 = vmatpush.msra.mxu2 %v2121_v55 }
  0x84   : > { %2506 = vst [vmem:[#allocation45_spill] sm:$0xff] %v1987_v51  ;;  %485 = vmatpush.msra.mxu3 %v2124_v59  ;;  %399 = vmatpush.msra.mxu0 %v2129_v60 }
  0x85   : > { %2507 = vst [vmem:[#allocation46_spill] sm:$0xff] %v1990_v52  ;;  %428 = vmatpush.msra.mxu1 %v2132_v3  ;;  %457 = vmatpush.msra.mxu2 %v2137_v4 }
  0x86   : > { %2508 = vst [vmem:[#allocation47_spill] sm:$0xff] %v2001_v57  ;;  %486 = vmatpush.msra.mxu3 %v2140_v21  ;;  %400 = vmatmul.f32.vlgmr.msra.gmra.mxu0 %v364_v20 }
  0x87   : > { %2509 = vst [vmem:[#allocation48_spill] sm:$0xff] %v2004_v58  ;;  %429 = vmatmul.f32.vlgmr.msra.gmra.mxu1 %v364_v20  ;;  %458 = vmatmul.f32.vlgmr.msra.gmra.mxu2 %v364_v20 }
  0x88   : > { %487 = vmatmul.f32.vlgmr.msra.gmra.mxu3 %v364_v20 }
  0x8e   : > { %403 = vmatmul.f32.gmra.mxu0 %v365_v26 }
  0x8f   : > { %432 = vmatmul.f32.gmra.mxu1 %v365_v26  ;;  %461 = vmatmul.f32.gmra.mxu2 %v365_v26 }
  0x90   : > { %490 = vmatmul.f32.gmra.mxu3 %v365_v26 }
  0x96   : > { %406 = vmatmul.f32.gmra.mxu0 %v366_v25 }
  0x97   : > { %435 = vmatmul.f32.gmra.mxu1 %v366_v25  ;;  %464 = vmatmul.f32.gmra.mxu2 %v366_v25 }
  0x98   : > { %493 = vmatmul.f32.gmra.mxu3 %v366_v25 }
  0x9e   : > { %409 = vmatmul.f32.gmra.mxu0 %v367_v19 }
  0x9f   : > { %438 = vmatmul.f32.gmra.mxu1 %v367_v19  ;;  %467 = vmatmul.f32.gmra.mxu2 %v367_v19 }
  0xa0   : > { %496 = vmatmul.f32.gmra.mxu3 %v367_v19 }
 0x103   : > { %v401_v18 = vpop.f32.mrf.mxu0 }
 0x104   : > { %v430_v32 = vpop.f32.mrf.mxu1  ;;  %v500_v41 = vmax.f32 %v401_v18, 0.0  ;;  %v368_v18 = vld [vmem:[%s2156_s0] sm:$0xff] }
 0x105   : > { %v501_v58 = vmax.f32 %v430_v32, 0.0 }
 0x10a   : > { %v459_v31 = vpop.f32.mrf.mxu2 }
 0x10b   : > { %v488_v20 = vpop.f32.mrf.mxu3  ;;  %v404_v24 = vpop.f32.mrf.mxu0 }
 0x10c   : > { %v433_v23 = vpop.f32.mrf.mxu1  ;;  %v504_v51 = vmax.f32 %v404_v24, 0.0 }
 0x10d   : > { %v505_v42 = vmax.f32 %v433_v23, 0.0 }
 0x112   : > { %v462_v38 = vpop.f32.mrf.mxu2 }
 0x113   : > { %v491_v26 = vpop.f32.mrf.mxu3  ;;  %v407_v37 = vpop.f32.mrf.mxu0  ;;  %v506_v32 = vmax.f32 %v462_v38, 0.0  ;;  %v371_v38 = vld [vmem:[%s2156_s0 + $0x18] sm:$0xff] }
 0x114   : > { %v436_v30 = vpop.f32.mrf.mxu1  ;;  %v508_v36 = vmax.f32 %v407_v37, 0.0 }
 0x115   : > { %v509_v35 = vmax.f32 %v436_v30, 0.0 }
 0x11a   : > { %v465_v29 = vpop.f32.mrf.mxu2 }
 0x11b   : > { %v494_v46 = vpop.f32.mrf.mxu3  ;;  %v410_v25 = vpop.f32.mrf.mxu0  ;;  %v510_v24 = vmax.f32 %v465_v29, 0.0  ;;  %v369_v29 = vld [vmem:[%s2156_s0 + $0x8] sm:$0xff] }
 0x11c   : > { %v439_v43 = vpop.f32.mrf.mxu1  ;;  %v512_v19 = vmax.f32 %v410_v25, 0.0  ;;  %v511_v23 = vmax.f32 %v494_v46, 0.0  ;;  %v374_v46 = vld [vmem:[%s2156_s0 + $0x30] sm:$0xff] }
 0x11d   : > { %v513_v52 = vmax.f32 %v439_v43, 0.0  ;;  %v373_v43 = vld [vmem:[%s2156_s0 + $0x28] sm:$0xff]  ;;  %v382_v25 = vld [vmem:[%s2156_s0 + $0x70] sm:$0xff] }
 0x11e   : > { %577 = vmatpush.msrb.mxu0 %v512_v19  ;;  %v383_v19 = vld [vmem:[%s2156_s0 + $0x78] sm:$0xff] }
 0x11f   : > { %642 = vmatpush.msrb.mxu1 %v513_v52  ;;  %v377_v52 = vld [vmem:[%s2156_s0 + $0x48] sm:$0xff] }
 0x120   : > { %578 = vmatpush.msrb.mxu0 %v508_v36  ;;  %v502_v36 = vmax.f32 %v459_v31, 0.0  ;;  %v370_v31 = vld [vmem:[%s2156_s0 + $0x10] sm:$0xff] }
 0x121   : > { %643 = vmatpush.msrb.mxu1 %v509_v35  ;;  %v507_v35 = vmax.f32 %v491_v26, 0.0  ;;  %v381_v26 = vld [vmem:[%s2156_s0 + $0x68] sm:$0xff] }
 0x122   : > { %v468_v57 = vpop.f32.mrf.mxu2  ;;  %579 = vmatpush.msrb.mxu0 %v504_v51  ;;  %v376_v51 = vld [vmem:[%s2156_s0 + $0x40] sm:$0xff] }
 0x123   : > { %v497_v48 = vpop.f32.mrf.mxu3  ;;  %644 = vmatpush.msrb.mxu1 %v505_v42  ;;  %v514_v30 = vmax.f32 %v468_v57, 0.0  ;;  %v503_v42 = vmax.f32 %v488_v20, 0.0  ;;  %v378_v57 = vld [vmem:[%s2156_s0 + $0x50] sm:$0xff]  ;;  %v380_v20 = vld [vmem:[%s2156_s0 + $0x60] sm:$0xff] }
 0x124   : > { %v515_v37 = vmax.f32 %v497_v48, 0.0  ;;  %580 = vmatpush.msrb.mxu0 %v500_v41  ;;  %v372_v41 = vld [vmem:[%s2156_s0 + $0x20] sm:$0xff]  ;;  %v375_v48 = vld [vmem:[%s2156_s0 + $0x38] sm:$0xff] }
 0x125   : > { %645 = vmatpush.msrb.mxu1 %v501_v58  ;;  %707 = vmatpush.msrb.mxu2 %v514_v30  ;;  %v379_v58 = vld [vmem:[%s2156_s0 + $0x58] sm:$0xff]  ;;  %v892_v30 = vmul.f32 %v1906_v16, %v2129_v60  ;;  %v896_v60 = vmul.f32 %v1906_v16, %v2113_v50 }
 0x126   : > { %772 = vmatpush.msrb.mxu3 %v515_v37  ;;  %1244 = vmatmul.msk.f32.vlgmr.msrb.gmra.mxu0 %vm516_vm0, %v368_v18  ;;  %v893_v37 = vmul.f32 %v1906_v16, %v2132_v3  ;;  %v897_v3 = vmul.f32 %v1906_v16, %v2116_v54  ;;  %v900_v54 = vmul.f32 %v1906_v16, %v2097_v40 }
 0x127   : > { %1260 = vmatmul.msk.f32.vlgmr.msrb.gmra.mxu1 %vm516_vm0, %v368_v18  ;;  %708 = vmatpush.msrb.mxu2 %v510_v24  ;;  %v899_v40 = vmul.f32 %v1906_v16, %v2124_v59 }
 0x128   : > { %773 = vmatpush.msrb.mxu3 %v511_v23 }
 0x129   : > { %709 = vmatpush.msrb.mxu2 %v506_v32 }
 0x12a   : > { %774 = vmatpush.msrb.mxu3 %v507_v35 }
 0x12b   : > { %710 = vmatpush.msrb.mxu2 %v502_v36 }
 0x12c   : > { %775 = vmatpush.msrb.mxu3 %v503_v42  ;;  %1276 = vmatmul.msk.f32.vlgmr.msrb.gmra.mxu2 %vm516_vm0, %v368_v18 }
 0x12d   : > { %1292 = vmatmul.msk.f32.vlgmr.msrb.gmra.mxu3 %vm516_vm0, %v368_v18 }
 0x12e   : > { %1245 = vmatmul.msk.f32.gmra.mxu0 %vm516_vm0, %v369_v29 }
 0x12f   : > { %1261 = vmatmul.msk.f32.gmra.mxu1 %vm516_vm0, %v369_v29 }
 0x134   : > { %1277 = vmatmul.msk.f32.gmra.mxu2 %vm516_vm0, %v369_v29 }
 0x135   : > { %1293 = vmatmul.msk.f32.gmra.mxu3 %vm516_vm0, %v369_v29 }
 0x136   : > { %1246 = vmatmul.msk.f32.gmra.mxu0 %vm516_vm0, %v370_v31 }
 0x137   : > { %1262 = vmatmul.msk.f32.gmra.mxu1 %vm516_vm0, %v370_v31 }
 0x13c   : > { %1278 = vmatmul.msk.f32.gmra.mxu2 %vm516_vm0, %v370_v31 }
 0x13d   : > { %1294 = vmatmul.msk.f32.gmra.mxu3 %vm516_vm0, %v370_v31 }
 0x13e   : > { %1247 = vmatmul.msk.f32.gmra.mxu0 %vm516_vm0, %v371_v38 }
 0x13f   : > { %1263 = vmatmul.msk.f32.gmra.mxu1 %vm516_vm0, %v371_v38 }
 0x144   : > { %1279 = vmatmul.msk.f32.gmra.mxu2 %vm516_vm0, %v371_v38 }
 0x145   : > { %1295 = vmatmul.msk.f32.gmra.mxu3 %vm516_vm0, %v371_v38 }
 0x146   : > { %1248 = vmatmul.msk.f32.gmra.mxu0 %vm516_vm0, %v372_v41 }
 0x147   : > { %1264 = vmatmul.msk.f32.gmra.mxu1 %vm516_vm0, %v372_v41 }
 0x14c   : > { %1280 = vmatmul.msk.f32.gmra.mxu2 %vm516_vm0, %v372_v41 }
 0x14d   : > { %1296 = vmatmul.msk.f32.gmra.mxu3 %vm516_vm0, %v372_v41  ;;  %v894_v41 = vmul.f32 %v1906_v16, %v2137_v4 }
 0x14e   : > { %1249 = vmatmul.msk.f32.gmra.mxu0 %vm516_vm0, %v373_v43 }
 0x14f   : > { %1265 = vmatmul.msk.f32.gmra.mxu1 %vm516_vm0, %v373_v43 }
 0x154   : > { %1281 = vmatmul.msk.f32.gmra.mxu2 %vm516_vm0, %v373_v43 }
 0x155   : > { %1297 = vmatmul.msk.f32.gmra.mxu3 %vm516_vm0, %v373_v43  ;;  %v895_v43 = vmul.f32 %v1906_v16, %v2140_v21 }
 0x156   : > { %1250 = vmatmul.msk.f32.gmra.mxu0 %vm516_vm0, %v374_v46 }
 0x157   : > { %1266 = vmatmul.msk.f32.gmra.mxu1 %vm516_vm0, %v374_v46 }
 0x15c   : > { %1282 = vmatmul.msk.f32.gmra.mxu2 %vm516_vm0, %v374_v46 }
 0x15d   : > { %1298 = vmatmul.msk.f32.gmra.mxu3 %vm516_vm0, %v374_v46 }
 0x15e   : > { %1251 = vmatmul.msk.f32.gmra.mxu0 %vm516_vm0, %v375_v48 }
 0x15f   : > { %1267 = vmatmul.msk.f32.gmra.mxu1 %vm516_vm0, %v375_v48 }
 0x164   : > { %1283 = vmatmul.msk.f32.gmra.mxu2 %vm516_vm0, %v375_v48 }
 0x165   : > { %1299 = vmatmul.msk.f32.gmra.mxu3 %vm516_vm0, %v375_v48 }
 0x166   : > { %1252 = vmatmul.msk.f32.gmra.mxu0 %vm516_vm0, %v376_v51 }
 0x167   : > { %1268 = vmatmul.msk.f32.gmra.mxu1 %vm516_vm0, %v376_v51 }
 0x16c   : > { %1284 = vmatmul.msk.f32.gmra.mxu2 %vm516_vm0, %v376_v51 }
 0x16d   : > { %1300 = vmatmul.msk.f32.gmra.mxu3 %vm516_vm0, %v376_v51 }
 0x16e   : > { %1253 = vmatmul.msk.f32.gmra.mxu0 %vm516_vm0, %v377_v52 }
 0x16f   : > { %1269 = vmatmul.msk.f32.gmra.mxu1 %vm516_vm0, %v377_v52 }
 0x174   : > { %1285 = vmatmul.msk.f32.gmra.mxu2 %vm516_vm0, %v377_v52 }
 0x175   : > { %1301 = vmatmul.msk.f32.gmra.mxu3 %vm516_vm0, %v377_v52 }
 0x176   : > { %1254 = vmatmul.msk.f32.gmra.mxu0 %vm516_vm0, %v378_v57 }
 0x177   : > { %1270 = vmatmul.msk.f32.gmra.mxu1 %vm516_vm0, %v378_v57 }
 0x17c   : > { %1286 = vmatmul.msk.f32.gmra.mxu2 %vm516_vm0, %v378_v57 }
 0x17d   : > { %1302 = vmatmul.msk.f32.gmra.mxu3 %vm516_vm0, %v378_v57 }
 0x17e   : > { %1255 = vmatmul.msk.f32.gmra.mxu0 %vm516_vm0, %v379_v58 }
 0x17f   : > { %1271 = vmatmul.msk.f32.gmra.mxu1 %vm516_vm0, %v379_v58 }
 0x184   : > { %1287 = vmatmul.msk.f32.gmra.mxu2 %vm516_vm0, %v379_v58 }
 0x185   : > { %1303 = vmatmul.msk.f32.gmra.mxu3 %vm516_vm0, %v379_v58  ;;  %v901_v58 = vmul.f32 %v1906_v16, %v2100_v44 }
 0x186   : > { %1256 = vmatmul.msk.f32.gmra.mxu0 %vm516_vm0, %v380_v20 }
 0x187   : > { %1272 = vmatmul.msk.f32.gmra.mxu1 %vm516_vm0, %v380_v20 }
 0x18c   : > { %1288 = vmatmul.msk.f32.gmra.mxu2 %vm516_vm0, %v380_v20 }
 0x18d   : > { %1304 = vmatmul.msk.f32.gmra.mxu3 %vm516_vm0, %v380_v20 }
 0x18e   : > { %1257 = vmatmul.msk.f32.gmra.mxu0 %vm516_vm0, %v381_v26 }
 0x18f   : > { %1273 = vmatmul.msk.f32.gmra.mxu1 %vm516_vm0, %v381_v26 }
 0x194   : > { %1289 = vmatmul.msk.f32.gmra.mxu2 %vm516_vm0, %v381_v26 }
 0x195   : > { %1305 = vmatmul.msk.f32.gmra.mxu3 %vm516_vm0, %v381_v26 }
 0x196   : > { %1258 = vmatmul.msk.f32.gmra.mxu0 %vm516_vm0, %v382_v25 }
 0x197   : > { %1274 = vmatmul.msk.f32.gmra.mxu1 %vm516_vm0, %v382_v25 }
 0x19c   : > { %1290 = vmatmul.msk.f32.gmra.mxu2 %vm516_vm0, %v382_v25 }
 0x19d   : > { %1306 = vmatmul.msk.f32.gmra.mxu3 %vm516_vm0, %v382_v25 }
 0x19e   : > { %1259 = vmatmul.msk.f32.gmra.mxu0 %vm516_vm0, %v383_v19 }
 0x19f   : > { %1275 = vmatmul.msk.f32.gmra.mxu1 %vm516_vm0, %v383_v19 }
 0x1a3   : > { %v582_v24 = vpop.f32.mrf.mxu0 }
 0x1a4   : > { %v647_v23 = vpop.f32.mrf.mxu1  ;;  %1291 = vmatmul.msk.f32.gmra.mxu2 %vm516_vm0, %v383_v19  ;;  %v825_v18 = vmax.f32 %v582_v24, 0.0 }
 0x1a5   : > { %1307 = vmatmul.msk.f32.gmra.mxu3 %vm516_vm0, %v383_v19  ;;  %v826_v32 = vmax.f32 %v647_v23, 0.0 }
 0x1a6   : > { %v956_v35 = vadd.f32 %v892_v30, %v825_v18  ;;  %v898_v30 = vmul.f32 %v1906_v16, %v2121_v55 }
 0x1a7   : > { %v957_v36 = vadd.f32 %v893_v37, %v826_v32 }
 0x1a8   : > { %1020 = vst [vmem:[%s2244_s13] sm:$0xff] %v956_v35  ;;  %v904_v35 = vmul.f32 %v1906_v16, %v2081_v28  ;;  %v903_v28 = vmul.f32 %v1906_v16, %v2108_v49 }
 0x1a9   : > { %1021 = vst [vmem:[%s2244_s13 + $0x8] sm:$0xff] %v957_v36  ;;  %v905_v36 = vmul.f32 %v1906_v16, %v2084_v33 }
 0x1ab   : > { %v585_v42 = vpop.f32.mrf.mxu0 }
 0x1ac   : > { %v650_v29 = vpop.f32.mrf.mxu1  ;;  %v829_v31 = vmax.f32 %v585_v42, 0.0 }
 0x1ad   : > { %v830_v38 = vmax.f32 %v650_v29, 0.0 }
 0x1ae   : > { %v960_v46 = vadd.f32 %v896_v60, %v829_v31  ;;  %v902_v31 = vmul.f32 %v1906_v16, %v2105_v45 }
 0x1af   : > { %v961_v48 = vadd.f32 %v897_v3, %v830_v38  ;;  %v712_v51 = vpop.f32.mrf.mxu2 }
 0x1b0   : > { %v777_v52 = vpop.f32.mrf.mxu3  ;;  %v827_v50 = vmax.f32 %v712_v51, 0.0  ;;  %1024 = vst [vmem:[%s2244_s13 + $0x20] sm:$0xff] %v960_v46  ;;  %v908_v51 = vmul.f32 %v1906_v16, %v2065_v15  ;;  %v907_v15 = vmul.f32 %v1906_v16, %v2092_v39 }
 0x1b1   : > { %v828_v57 = vmax.f32 %v777_v52, 0.0  ;;  %1025 = vst [vmem:[%s2244_s13 + $0x28] sm:$0xff] %v961_v48  ;;  %v909_v52 = vmul.f32 %v1906_v16, %v2068_v17 }
 0x1b2   : > { %v958_v4 = vadd.f32 %v894_v41, %v827_v50 }
 0x1b3   : > { %v959_v20 = vadd.f32 %v895_v43, %v828_v57  ;;  %v588_v21 = vpop.f32.mrf.mxu0 }
 0x1b4   : > { %v653_v26 = vpop.f32.mrf.mxu1  ;;  %1022 = vst [vmem:[%s2244_s13 + $0x10] sm:$0xff] %v958_v4  ;;  %v833_v25 = vmax.f32 %v588_v21, 0.0  ;;  %v906_v4 = vmul.f32 %v1906_v16, %v2089_v34 }
 0x1b5   : > { %v834_v19 = vmax.f32 %v653_v26, 0.0  ;;  %1023 = vst [vmem:[%s2244_s13 + $0x18] sm:$0xff] %v959_v20 }
 0x1b6   : > { %v964_v37 = vadd.f32 %v900_v54, %v833_v25 }
 0x1b7   : > { %v965_v24 = vadd.f32 %v901_v58, %v834_v19  ;;  %v715_v44 = vpop.f32.mrf.mxu2 }
 0x1b8   : > { %v780_v23 = vpop.f32.mrf.mxu3  ;;  %v831_v18 = vmax.f32 %v715_v44, 0.0  ;;  %1028 = vst [vmem:[%s2244_s13 + $0x40] sm:$0xff] %v964_v37 }
 0x1b9   : > { %v832_v32 = vmax.f32 %v780_v23, 0.0  ;;  %1029 = vst [vmem:[%s2244_s13 + $0x48] sm:$0xff] %v965_v24 }
 0x1ba   : > { %v962_v55 = vadd.f32 %v898_v30, %v831_v18  ;;  %v912_v30 = vmul.f32 %v1906_v16, %v2049_v11  ;;  %v910_v18 = vmul.f32 %v1906_v16, %v2073_v22  ;;  %v911_v11 = vmul.f32 %v1906_v16, %v2076_v27 }
 0x1bb   : > { %v963_v60 = vadd.f32 %v899_v40, %v832_v32  ;;  %v591_v59 = vpop.f32.mrf.mxu0  ;;  %v913_v40 = vmul.f32 %v1906_v16, %v2052_v12 }
 0x1bc   : > { %v656_v3 = vpop.f32.mrf.mxu1  ;;  %1026 = vst [vmem:[%s2244_s13 + $0x30] sm:$0xff] %v962_v55  ;;  %v837_v42 = vmax.f32 %v591_v59, 0.0  ;;  %v916_v59 = vmul.f32 %v1906_v16, %v2035_v7  ;;  %v915_v7 = vmul.f32 %v1906_v16, %v2060_v14 }
 0x1bd   : > { %v838_v29 = vmax.f32 %v656_v3, 0.0  ;;  %1027 = vst [vmem:[%s2244_s13 + $0x38] sm:$0xff] %v963_v60  ;;  %v917_v3 = vmul.f32 %v1906_v16, %v2038_v8 }
 0x1be   : > { %v968_v38 = vadd.f32 %v904_v35, %v837_v42 }
 0x1bf   : > { %v969_v41 = vadd.f32 %v905_v36, %v838_v29  ;;  %v718_v33 = vpop.f32.mrf.mxu2 }
 0x1c0   : > { %v783_v43 = vpop.f32.mrf.mxu3  ;;  %v835_v46 = vmax.f32 %v718_v33, 0.0  ;;  %1032 = vst [vmem:[%s2244_s13 + $0x60] sm:$0xff] %v968_v38  ;;  %v914_v38 = vmul.f32 %v1906_v16, %v2057_v13 }
 0x1c1   : > { %v836_v48 = vmax.f32 %v783_v43, 0.0  ;;  %1033 = vst [vmem:[%s2244_s13 + $0x68] sm:$0xff] %v969_v41 }
 0x1c2   : > { %v966_v45 = vadd.f32 %v902_v31, %v835_v46 }
 0x1c3   : > { %v967_v50 = vadd.f32 %v903_v28, %v836_v48  ;;  %v594_v49 = vpop.f32.mrf.mxu0 }
 0x1c4   : > { %v659_v57 = vpop.f32.mrf.mxu1  ;;  %1030 = vst [vmem:[%s2244_s13 + $0x50] sm:$0xff] %v966_v45  ;;  %v841_v54 = vmax.f32 %v594_v49, 0.0 }
 0x1c5   : > { %v842_v58 = vmax.f32 %v659_v57, 0.0  ;;  %1031 = vst [vmem:[%s2244_s13 + $0x58] sm:$0xff] %v967_v50 }
 0x1c6   : > { %v972_v20 = vadd.f32 %v908_v51, %v841_v54  ;;  %v920_v51 = vmul.f32 %v1906_v16, %v2018_v0  ;;  %v918_v54 = vmul.f32 %v1906_v16, %v2043_v9  ;;  %v919_v0 = vmul.f32 %v1906_v16, %v2046_v10 }
 0x1c7   : > { %v973_v21 = vadd.f32 %v909_v52, %v842_v58  ;;  %v721_v17 = vpop.f32.mrf.mxu2  ;;  %v921_v52 = vmul.f32 %v1906_v16, %v2021_v1 }
 0x1c8   : > { %v786_v26 = vpop.f32.mrf.mxu3  ;;  %v839_v25 = vmax.f32 %v721_v17, 0.0  ;;  %1036 = vst [vmem:[%s2244_s13 + $0x80] sm:$0xff] %v972_v20 }
 0x1c9   : > { %v840_v19 = vmax.f32 %v786_v26, 0.0  ;;  %1037 = vst [vmem:[%s2244_s13 + $0x88] sm:$0xff] %v973_v21 }
 0x1ca   : > { %v970_v34 = vadd.f32 %v906_v4, %v839_v25 }
 0x1cb   : > { %v971_v37 = vadd.f32 %v907_v15, %v840_v19  ;;  %v597_v39 = vpop.f32.mrf.mxu0 }
 0x1cc   : > { %v662_v24 = vpop.f32.mrf.mxu1  ;;  %1034 = vst [vmem:[%s2244_s13 + $0x70] sm:$0xff] %v970_v34  ;;  %v845_v44 = vmax.f32 %v597_v39, 0.0 }
 0x1cd   : > { %v846_v23 = vmax.f32 %v662_v24, 0.0  ;;  %1035 = vst [vmem:[%s2244_s13 + $0x78] sm:$0xff] %v971_v37 }
 0x1ce   : > { %v976_v32 = vadd.f32 %v912_v30, %v845_v44 }
 0x1cf   : > { %v977_v35 = vadd.f32 %v913_v40, %v846_v23  ;;  %v724_v12 = vpop.f32.mrf.mxu2 }
 0x1d0   : > { %v789_v36 = vpop.f32.mrf.mxu3  ;;  %v843_v55 = vmax.f32 %v724_v12, 0.0  ;;  %1040 = vst [vmem:[%s2244_s13 + $0xa0] sm:$0xff] %v976_v32 }
 0x1d1   : > { %v844_v60 = vmax.f32 %v789_v36, 0.0  ;;  %1041 = vst [vmem:[%s2244_s13 + $0xa8] sm:$0xff] %v977_v35 }
 0x1d2   : > { %v974_v22 = vadd.f32 %v910_v18, %v843_v55 }
 0x1d3   : > { %v975_v42 = vadd.f32 %v911_v11, %v844_v60  ;;  %v600_v27 = vpop.f32.mrf.mxu0 }
 0x1d4   : > { %v665_v29 = vpop.f32.mrf.mxu1  ;;  %1038 = vst [vmem:[%s2244_s13 + $0x90] sm:$0xff] %v974_v22  ;;  %v849_v31 = vmax.f32 %v600_v27, 0.0  ;;  %v2510_v22 = vld [vmem:[#allocation44_spill] sm:$0xff] }
 0x1d5   : > { %v850_v28 = vmax.f32 %v665_v29, 0.0  ;;  %1039 = vst [vmem:[%s2244_s13 + $0x98] sm:$0xff] %v975_v42 }
 0x1d6   : > { %v980_v41 = vadd.f32 %v916_v59, %v849_v31 }
 0x1d7   : > { %v981_v33 = vadd.f32 %v917_v3, %v850_v28  ;;  %v727_v8 = vpop.f32.mrf.mxu2 }
 0x1d8   : > { %v792_v43 = vpop.f32.mrf.mxu3  ;;  %v847_v46 = vmax.f32 %v727_v8, 0.0  ;;  %1044 = vst [vmem:[%s2244_s13 + $0xc0] sm:$0xff] %v980_v41 }
 0x1d9   : > { %v848_v48 = vmax.f32 %v792_v43, 0.0  ;;  %1045 = vst [vmem:[%s2244_s13 + $0xc8] sm:$0xff] %v981_v33  ;;  %v2513_v43 = vld [vmem:[#allocation40_spill] sm:$0xff] }
 0x1da   : > { %v978_v13 = vadd.f32 %v914_v38, %v847_v46  ;;  %v2512_v38 = vld [vmem:[#allocation48_spill] sm:$0xff] }
 0x1db   : > { %v979_v45 = vadd.f32 %v915_v7, %v848_v48  ;;  %v603_v14 = vpop.f32.mrf.mxu0  ;;  %v2514_v48 = vld [vmem:[#allocation41_spill] sm:$0xff] }
 0x1dc   : > { %v668_v50 = vpop.f32.mrf.mxu1  ;;  %1042 = vst [vmem:[%s2244_s13 + $0xb0] sm:$0xff] %v978_v13  ;;  %v853_v49 = vmax.f32 %v603_v14, 0.0 }
 0x1dd   : > { %v854_v57 = vmax.f32 %v668_v50, 0.0  ;;  %1043 = vst [vmem:[%s2244_s13 + $0xb8] sm:$0xff] %v979_v45  ;;  %v2515_v50 = vld [vmem:[#allocation45_spill] sm:$0xff] }
 0x1de   : > { %v984_v58 = vadd.f32 %v920_v51, %v853_v49 }
 0x1df   : > { %v985_v1 = vadd.f32 %v921_v52, %v854_v57  ;;  %v730_v4 = vpop.f32.mrf.mxu2  ;;  %v2516_v57 = vld [vmem:[#allocation46_spill] sm:$0xff] }
 0x1e0   : > { %v795_v15 = vpop.f32.mrf.mxu3  ;;  %v851_v20 = vmax.f32 %v730_v4, 0.0  ;;  %1048 = vst [vmem:[%s2244_s13 + $0xe0] sm:$0xff] %v984_v58 }
 0x1e1   : > { %v852_v21 = vmax.f32 %v795_v15, 0.0  ;;  %1049 = vst [vmem:[%s2244_s13 + $0xe8] sm:$0xff] %v985_v1  ;;  %v2517_v15 = vld [vmem:[#allocation36_spill] sm:$0xff] }
 0x1e2   : > { %v982_v17 = vadd.f32 %v918_v54, %v851_v20 }
 0x1e3   : > { %v983_v26 = vadd.f32 %v919_v0, %v852_v21  ;;  %v606_v25 = vpop.f32.mrf.mxu0  ;;  %v2518_v21 = vld [vmem:[#allocation37_spill] sm:$0xff] }
 0x1e4   : > { %v671_v19 = vpop.f32.mrf.mxu1  ;;  %1046 = vst [vmem:[%s2244_s13 + $0xd0] sm:$0xff] %v982_v17  ;;  %v857_v9 = vmax.f32 %v606_v25, 0.0 }
 0x1e5   : > { %v858_v30 = vmax.f32 %v671_v19, 0.0  ;;  %1047 = vst [vmem:[%s2244_s13 + $0xd8] sm:$0xff] %v983_v26 }
 0x1e6   : > { %v988_v16 = vadd.f32 %v2009_v61, %v857_v9 }
 0x1e7   : > { %v989_v10 = vadd.f32 %v2012_v62, %v858_v30  ;;  %v733_v40 = vpop.f32.mrf.mxu2  ;;  %v2519_v30 = vld [vmem:[#allocation42_spill] sm:$0xff] }
 0x1e8   : > { %v798_v34 = vpop.f32.mrf.mxu3  ;;  %v855_v37 = vmax.f32 %v733_v40, 0.0  ;;  %1052 = vst [vmem:[%s2244_s13 + $0x100] sm:$0xff] %v988_v16 }
 0x1e9   : > { %v856_v39 = vmax.f32 %v798_v34, 0.0  ;;  %1053 = vst [vmem:[%s2244_s13 + $0x108] sm:$0xff] %v989_v10  ;;  %v2520_v10 = vld [vmem:[#allocation43_spill] sm:$0xff] }
 0x1ea   : > { %v986_v24 = vadd.f32 %v2029_v5, %v855_v37 }
 0x1eb   : > { %v987_v44 = vadd.f32 %v2032_v6, %v856_v39  ;;  %v609_v23 = vpop.f32.mrf.mxu0 }
 0x1ec   : > { %v674_v18 = vpop.f32.mrf.mxu1  ;;  %1050 = vst [vmem:[%s2244_s13 + $0xf0] sm:$0xff] %v986_v24  ;;  %v861_v11 = vmax.f32 %v609_v23, 0.0 }
 0x1ed   : > { %v862_v61 = vmax.f32 %v674_v18, 0.0  ;;  %1051 = vst [vmem:[%s2244_s13 + $0xf8] sm:$0xff] %v987_v44  ;;  %v2521_v44 = vld [vmem:[#allocation32_spill] sm:$0xff]  ;;  %v2522_v18 = vld [vmem:[#allocation33_spill] sm:$0xff] }
 0x1ee   : > { %v992_v62 = vadd.f32 %v1993_v53, %v861_v11 }
 0x1ef   : > { %v993_v32 = vadd.f32 %v1998_v56, %v862_v61  ;;  %v736_v35 = vpop.f32.mrf.mxu2 }
 0x1f0   : > { %v801_v12 = vpop.f32.mrf.mxu3  ;;  %v859_v36 = vmax.f32 %v736_v35, 0.0  ;;  %1056 = vst [vmem:[%s2244_s13 + $0x120] sm:$0xff] %v992_v62 }
 0x1f1   : > { %v860_v55 = vmax.f32 %v801_v12, 0.0  ;;  %1057 = vst [vmem:[%s2244_s13 + $0x128] sm:$0xff] %v993_v32  ;;  %v2523_v12 = vld [vmem:[#allocation38_spill] sm:$0xff] }
 0x1f2   : > { %v990_v5 = vadd.f32 %v2015_v63, %v859_v36  ;;  %v2511_v63 = vld [vmem:[#allocation47_spill] sm:$0xff] }
 0x1f3   : > { %v991_v6 = vadd.f32 %v2024_v2, %v860_v55  ;;  %v612_v60 = vpop.f32.mrf.mxu0  ;;  %v2524_v55 = vld [vmem:[#allocation39_spill] sm:$0xff] }
 0x1f4   : > { %v677_v59 = vpop.f32.mrf.mxu1  ;;  %1054 = vst [vmem:[%s2244_s13 + $0x110] sm:$0xff] %v990_v5  ;;  %v865_v3 = vmax.f32 %v612_v60, 0.0 }
 0x1f5   : > { %v866_v53 = vmax.f32 %v677_v59, 0.0  ;;  %1055 = vst [vmem:[%s2244_s13 + $0x118] sm:$0xff] %v991_v6 }
 0x1f6   : > { %v996_v56 = vadd.f32 %v1979_v47, %v865_v3 }
 0x1f7   : > { %v997_v42 = vadd.f32 %v2510_v22, %v866_v53  ;;  %v739_v27 = vpop.f32.mrf.mxu2  ;;  %v2525_v53 = vld [vmem:[#allocation28_spill] sm:$0xff]  ;;  %v2526_v22 = vld [vmem:[#allocation29_spill] sm:$0xff] }
 0x1f8   : > { %v804_v29 = vpop.f32.mrf.mxu3  ;;  %v863_v31 = vmax.f32 %v739_v27, 0.0  ;;  %1060 = vst [vmem:[%s2244_s13 + $0x140] sm:$0xff] %v996_v56 }
 0x1f9   : > { %v864_v28 = vmax.f32 %v804_v29, 0.0  ;;  %1061 = vst [vmem:[%s2244_s13 + $0x148] sm:$0xff] %v997_v42 }
 0x1fa   : > { %v994_v2 = vadd.f32 %v2511_v63, %v863_v31  ;;  %v2527_v63 = vld [vmem:[#allocation34_spill] sm:$0xff] }
 0x1fb   : > { %v995_v7 = vadd.f32 %v2512_v38, %v864_v28  ;;  %v615_v41 = vpop.f32.mrf.mxu0  ;;  %v2528_v38 = vld [vmem:[#allocation35_spill] sm:$0xff] }
 0x1fc   : > { %v680_v33 = vpop.f32.mrf.mxu1  ;;  %1058 = vst [vmem:[%s2244_s13 + $0x130] sm:$0xff] %v994_v2  ;;  %v869_v8 = vmax.f32 %v615_v41, 0.0 }
 0x1fd   : > { %v870_v47 = vmax.f32 %v680_v33, 0.0  ;;  %1059 = vst [vmem:[%s2244_s13 + $0x138] sm:$0xff] %v995_v7 }
 0x1fe   : > { %v1000_v46 = vadd.f32 %v2513_v43, %v869_v8  ;;  %v2529_v43 = vld [vmem:[#allocation24_spill] sm:$0xff] }
 0x1ff   : > { %v1001_v51 = vadd.f32 %v2514_v48, %v870_v47  ;;  %v742_v52 = vpop.f32.mrf.mxu2  ;;  %v2530_v48 = vld [vmem:[#allocation25_spill] sm:$0xff] }
 0x200   : > { %v807_v13 = vpop.f32.mrf.mxu3  ;;  %v867_v45 = vmax.f32 %v742_v52, 0.0  ;;  %1064 = vst [vmem:[%s2244_s13 + $0x160] sm:$0xff] %v1000_v46 }
 0x201   : > { %v868_v14 = vmax.f32 %v807_v13, 0.0  ;;  %1065 = vst [vmem:[%s2244_s13 + $0x168] sm:$0xff] %v1001_v51 }
 0x202   : > { %v998_v49 = vadd.f32 %v2515_v50, %v867_v45  ;;  %v2531_v50 = vld [vmem:[#allocation30_spill] sm:$0xff] }
 0x203   : > { %v999_v54 = vadd.f32 %v2516_v57, %v868_v14  ;;  %v618_v0 = vpop.f32.mrf.mxu0  ;;  %v2532_v57 = vld [vmem:[#allocation31_spill] sm:$0xff] }
 0x204   : > { %v683_v58 = vpop.f32.mrf.mxu1  ;;  %1062 = vst [vmem:[%s2244_s13 + $0x150] sm:$0xff] %v998_v49  ;;  %v873_v1 = vmax.f32 %v618_v0, 0.0 }
 0x205   : > { %v874_v4 = vmax.f32 %v683_v58, 0.0  ;;  %1063 = vst [vmem:[%s2244_s13 + $0x158] sm:$0xff] %v999_v54 }
 0x206   : > { %v1004_v20 = vadd.f32 %v2517_v15, %v873_v1  ;;  %v2534_v15 = vld [vmem:[#allocation26_spill] sm:$0xff] }
 0x207   : > { %v1005_v17 = vadd.f32 %v2518_v21, %v874_v4  ;;  %v745_v26 = vpop.f32.mrf.mxu2  ;;  %v2535_v21 = vld [vmem:[#allocation27_spill] sm:$0xff] }
 0x208   : > { %v810_v25 = vpop.f32.mrf.mxu3  ;;  %v871_v19 = vmax.f32 %v745_v26, 0.0  ;;  %1068 = vst [vmem:[%s2244_s13 + $0x180] sm:$0xff] %v1004_v20 }
 0x209   : > { %v872_v9 = vmax.f32 %v810_v25, 0.0  ;;  %1069 = vst [vmem:[%s2244_s13 + $0x188] sm:$0xff] %v1005_v17 }
 0x20a   : > { %v1002_v16 = vadd.f32 %v2519_v30, %v871_v19 }
 0x20b   : > { %v1003_v40 = vadd.f32 %v2520_v10, %v872_v9  ;;  %v621_v34 = vpop.f32.mrf.mxu0 }
 0x20c   : > { %v686_v37 = vpop.f32.mrf.mxu1  ;;  %1066 = vst [vmem:[%s2244_s13 + $0x170] sm:$0xff] %v1002_v16  ;;  %v877_v39 = vmax.f32 %v621_v34, 0.0 }
 0x20d   : > { %v878_v24 = vmax.f32 %v686_v37, 0.0  ;;  %1067 = vst [vmem:[%s2244_s13 + $0x178] sm:$0xff] %v1003_v40 }
 0x20e   : > { %v1008_v23 = vadd.f32 %v2521_v44, %v877_v39 }
 0x20f   : > { %v1009_v11 = vadd.f32 %v2522_v18, %v878_v24  ;;  %v748_v61 = vpop.f32.mrf.mxu2 }
 0x210   : > { %v813_v62 = vpop.f32.mrf.mxu3  ;;  %v875_v32 = vmax.f32 %v748_v61, 0.0  ;;  %1072 = vst [vmem:[%s2244_s13 + $0x1a0] sm:$0xff] %v1008_v23 }
 0x211   : > { %v876_v35 = vmax.f32 %v813_v62, 0.0  ;;  %1073 = vst [vmem:[%s2244_s13 + $0x1a8] sm:$0xff] %v1009_v11 }
 0x212   : > { %v1006_v36 = vadd.f32 %v2523_v12, %v875_v32 }
 0x213   : > { %v1007_v5 = vadd.f32 %v2524_v55, %v876_v35  ;;  %v624_v6 = vpop.f32.mrf.mxu0 }
 0x214   : > { %v689_v60 = vpop.f32.mrf.mxu1  ;;  %1070 = vst [vmem:[%s2244_s13 + $0x190] sm:$0xff] %v1006_v36  ;;  %v881_v59 = vmax.f32 %v624_v6, 0.0 }
 0x215   : > { %v882_v3 = vmax.f32 %v689_v60, 0.0  ;;  %1071 = vst [vmem:[%s2244_s13 + $0x198] sm:$0xff] %v1007_v5 }
 0x216   : > { %v1012_v56 = vadd.f32 %v2525_v53, %v881_v59 }
 0x217   : > { %v1013_v42 = vadd.f32 %v2526_v22, %v882_v3  ;;  %v751_v27 = vpop.f32.mrf.mxu2 }
 0x218   : > { %v816_v29 = vpop.f32.mrf.mxu3  ;;  %v879_v31 = vmax.f32 %v751_v27, 0.0  ;;  %1076 = vst [vmem:[%s2244_s13 + $0x1c0] sm:$0xff] %v1012_v56 }
 0x219   : > { %v880_v28 = vmax.f32 %v816_v29, 0.0  ;;  %1077 = vst [vmem:[%s2244_s13 + $0x1c8] sm:$0xff] %v1013_v42 }
 0x21a   : > { %v1010_v2 = vadd.f32 %v2527_v63, %v879_v31 }
 0x21b   : > { %v1011_v7 = vadd.f32 %v2528_v38, %v880_v28  ;;  %v627_v41 = vpop.f32.mrf.mxu0 }
 0x21c   : > { %v692_v33 = vpop.f32.mrf.mxu1  ;;  %1074 = vst [vmem:[%s2244_s13 + $0x1b0] sm:$0xff] %v1010_v2  ;;  %v885_v8 = vmax.f32 %v627_v41, 0.0 }
 0x21d   : > { %v886_v47 = vmax.f32 %v692_v33, 0.0  ;;  %1075 = vst [vmem:[%s2244_s13 + $0x1b8] sm:$0xff] %v1011_v7 }
 0x21e   : > { %v1016_v46 = vadd.f32 %v2529_v43, %v885_v8 }
 0x21f   : > { %v1017_v51 = vadd.f32 %v2530_v48, %v886_v47  ;;  %v754_v52 = vpop.f32.mrf.mxu2 }
 0x220   : > { %v819_v13 = vpop.f32.mrf.mxu3  ;;  %v883_v45 = vmax.f32 %v754_v52, 0.0  ;;  %1080 = vst [vmem:[%s2244_s13 + $0x1e0] sm:$0xff] %v1016_v46 }
 0x221   : > { %v884_v14 = vmax.f32 %v819_v13, 0.0  ;;  %1081 = vst [vmem:[%s2244_s13 + $0x1e8] sm:$0xff] %v1017_v51 }
 0x222   : > { %v1014_v49 = vadd.f32 %v2531_v50, %v883_v45 }
 0x223   : > { %v1015_v54 = vadd.f32 %v2532_v57, %v884_v14 }
 0x224   : > { %1078 = vst [vmem:[%s2244_s13 + $0x1d0] sm:$0xff] %v1014_v49 }
 0x225   : > { %1079 = vst [vmem:[%s2244_s13 + $0x1d8] sm:$0xff] %v1015_v54 }
 0x227   : > { %v757_v0 = vpop.f32.mrf.mxu2 }
 0x228   : > { %v822_v58 = vpop.f32.mrf.mxu3  ;;  %v887_v1 = vmax.f32 %v757_v0, 0.0 }
 0x229   : > { %v888_v4 = vmax.f32 %v822_v58, 0.0 }
 0x22a   : > { %v1018_v20 = vadd.f32 %v2534_v15, %v887_v1 }
 0x22b   : > { %v1019_v17 = vadd.f32 %v2535_v21, %v888_v4 }
 0x22c   : > { %1082 = vst [vmem:[%s2244_s13 + $0x1f0] sm:$0xff] %v1018_v20 }
 0x22d   : > { %1083 = vst [vmem:[%s2244_s13 + $0x1f8] sm:$0xff] %v1019_v17 }
 0x22e   : > { %1549 = shalt.err (!%p1546_p11)
}
 0x22f   : > { %s1659_s15 = smov 512   ;;  %s1660_s0 = smov 2048  }
 0x230   : > { %s1661_s13 = smov 32  }
 0x231   : > { %1323 = dma.vmem_to_hbm [thread:$0]  (%p1784_p7), %s1100_s8, 8192, %s1102_s11, %s1085_s17, %s1659_s15, %s1660_s0, %s1661_s13  }
 0x232 PF: > { %p1339_p4 = scmp.ge.s32.totalorder %s1650_s9, 2  ;;  %s1116_s2 = sand.u32 1, %s1622_s27  }
 0x233   : > { %s1117_s14 = scalar_lea.sflag [#allocation7], %s1116_s2 }
 0x234   : > { %p1335_p8 = pnand %p1339_p4, %p1793_p10 }
 0x236   : > { %p1336_p9 = pneg %p1335_p8 }
 0x238   : > { %1605 = dma.done.wait (%p1336_p9), %s1117_s14, 8192  }
 0x239   : > { %1607 = vsyncadd (%p1336_p9), %s1117_s14, 4294959104  ;;  %s37_s9 = sadd.s32 1, %s1650_s9   ;;  %s2536_s29 = sld [smem:[#allocation17_spill]] }
 0x23a   : > { %p34_p12 = scmp.ge.s32.totalorder %s37_s9, 10   ;;  %s2537_s30 = sld [smem:[#allocation23_spill]] }
 0x23b   : > { %s2538_s6 = sld [smem:[#allocation18_spill]]  ;;  %s2542_s0 = smov %s1614_s26 }
 0x23c   : > { %s2539_s7 = sld [smem:[#allocation19_spill]]  ;;  %s2543_s26 = smov %s1618_s1 }
 0x23d   : > { %s2540_s20 = sld [smem:[#allocation20_spill]]  ;;  %s2544_s1 = smov %s1832_s19 }
 0x23e   : > { %s2541_s8 = sld [smem:[#allocation21_spill]]  ;;  %s2545_s27 = smov %s1626_s28 }
 0x23f   : > { %s2546_s28 = smov %s2536_s29  ;;  %36 = sbr.rel (!%p34_p12) target bundleno = 19 (0x13), region = 93 }
 0x240   : > { %s2547_s29 = smov %s2537_s30 }
 0x241   : > { %s2548_s30 = smov %s2538_s6 }
 0x242   : > { %s2549_s6 = smov %s2539_s7 }
 0x243   : > { %s2550_s7 = smov %s2540_s20 }
 0x244   :  { %1123 = vsyncpa [#allocation6], 1 }
 0x245   :  { %1125 = vsyncpa [#allocation6 + $0x1], 1 }
 0x246   :  { %1126 = vsyncpa [#allocation9], 1 }
 0x247   :  { %1128 = vsyncpa [#allocation9 + $0x1], 1 }
 0x248   :  { %1129 = vsyncpa [#allocation7], 1 }
 0x249   :  { %1131 = vsyncpa [#allocation7 + $0x1], 1 }

</bundles_post_ra>
